<compile_context>
chip_gen: v5e
topology: v5e:2x2
jax: 0.10.0
libtpu: 0.0.40
codegen_flags: <defaults>
</compile_context>

<pallas_src>
import jax
import jax.numpy as jnp
from jax import lax
from jax.experimental import pallas as pl
from jax.experimental.pallas import tpu as pltpu


KH = KW = 7
STRIDE = 2
PAD = 3
CIN = 3
COUT = 64
COUT_PAD = 128                 # lane-dense output width (full 128-lane vreg)
BN_EPS = 1e-5
K_IM2COL = KH * KW * CIN       # 147


def _round_up(x, m):
    return ((x + m - 1) // m) * m


# ---------------------------------------------------------------------------
# Pallas kernel: fused ReLU( patches @ W_folded + bias ), bf16 store
# ---------------------------------------------------------------------------
def _encoder_stem_kernel(p_ref, w_ref, b_ref, o_ref):
    # p_ref: (TM, K)        bf16 im2col patch tile
    # w_ref: (K, COUT_PAD)  bf16 conv weights with BN scale folded in (zero-padded cols)
    # b_ref: (1, COUT_PAD)  f32  folded BN bias (zero-padded cols)
    # o_ref: (TM, COUT_PAD) bf16
    acc = jnp.dot(p_ref[...], w_ref[...], preferred_element_type=jnp.float32)
    o_ref[...] = jnp.maximum(acc + b_ref[...], 0.0).astype(o_ref.dtype)


def _choose_m_tiling(m, tm_target):
    """Balanced M tiling: ~tm_target rows/block, multiple of 8, no input pad."""
    m8 = _round_up(m, 8)
    grid_m = pl.cdiv(m8, tm_target)
    if m8 > 2048:
        grid_m = max(grid_m, 2)      # v7x: keep both TensorCores busy
    if grid_m > 1 and grid_m % 2:
        grid_m += 1                  # v7x: balanced 2-way shard of the parallel axis
    tm = _round_up(pl.cdiv(m8, grid_m), 8)
    grid_m = pl.cdiv(m, tm)          # actual block count (last block may be ragged)
    return tm, grid_m


def _fused_conv_bn_relu_matmul(patches, w_mat, bias, *, tm_target=8192):
    """patches: (M, K) bf16, w_mat: (K, COUT_PAD) bf16, bias: (1, COUT_PAD) f32."""
    M, K = patches.shape
    CP = w_mat.shape[1]
    tm, grid_m = _choose_m_tiling(M, tm_target)

    cost = pl.CostEstimate(
        flops=2 * M * K * CP,
        transcendentals=0,
        bytes_accessed=(M * K * 2          # patch read (bf16)
                        + K * CP * 2       # weights (bf16)
                        + CP * 4           # bias (f32)
                        + M * CP * 2),     # output write (bf16)
    )

    return pl.pallas_call(
        _encoder_stem_kernel,
        out_shape=jax.ShapeDtypeStruct((M, CP), jnp.bfloat16),
        grid=(grid_m,),
        in_specs=[
            pl.BlockSpec((tm, K), lambda i: (i, 0)),
            pl.BlockSpec((K, CP), lambda i: (0, 0)),   # weights resident
            pl.BlockSpec((1, CP), lambda i: (0, 0)),   # bias resident
        ],
        out_specs=pl.BlockSpec((tm, CP), lambda i: (i, 0)),
        compiler_params=pltpu.CompilerParams(
            dimension_semantics=("parallel",),
            vmem_limit_bytes=48 * 1024 * 1024,
        ),
        cost_estimate=cost,
    )(patches, w_mat, bias)


# ---------------------------------------------------------------------------
# Wrapper reproducing Encoder.forward (eval-mode BN folded into weights/bias)
# ---------------------------------------------------------------------------
@jax.jit
def encoder_forward(x_nchw, conv_w, bn_gamma, bn_beta, bn_mean, bn_var):
    # x_nchw: (N, 3, H, W) f32    conv_w: (64, 3, 7, 7) f32
    N, C, H, W = x_nchw.shape
    Ho = (H + 2 * PAD - KH) // STRIDE + 1
    Wo = (W + 2 * PAD - KW) // STRIDE + 1

    # NCHW -> NHWC in bf16 (one small fused pass over the input).
    x = jnp.transpose(x_nchw, (0, 2, 3, 1)).astype(jnp.bfloat16)

    # im2col via grouped identity conv: no gather HLO, conv handles the spatial
    # padding, output lands directly as (N, Ho, Wo, 147) with K ordered (c, kh, kw).
    patches = lax.conv_general_dilated_patches(
        x, (KH, KW), (STRIDE, STRIDE), ((PAD, PAD), (PAD, PAD)),
        dimension_numbers=("NHWC", "OIHW", "NHWC"),
    )
    patches = patches.reshape(N * Ho * Wo, K_IM2COL)

    # Fold eval-mode BN: scale into the weights (bf16), bias kept f32; pad cols to 128.
    scale = bn_gamma / jnp.sqrt(bn_var + BN_EPS)                         # (64,)
    bias = bn_beta - bn_mean * scale                                     # (64,)
    # Weight K ordering must match the patches: (c, kh, kw).
    w_mat = jnp.transpose(conv_w, (1, 2, 3, 0)).reshape(K_IM2COL, COUT)
    w_mat = (w_mat * scale[None, :]).astype(jnp.bfloat16)
    w_mat = jnp.pad(w_mat, ((0, 0), (0, COUT_PAD - COUT)))               # zero pad cols
    bias = jnp.pad(bias, (0, COUT_PAD - COUT)).reshape(1, COUT_PAD).astype(jnp.float32)

    out = _fused_conv_bn_relu_matmul(patches, w_mat, bias)               # (M, 128) bf16

    # Slice valid channels, back to (N, Ho, Wo, 64), NCHW + f32 cast (one fused pass).
    out = out[:, :COUT].reshape(N, Ho, Wo, COUT)
    return jnp.transpose(out, (0, 3, 1, 2)).astype(jnp.float32)


# ---------------------------------------------------------------------------
# Pure-JAX f32 reference (correctness check of the Pallas path)
# ---------------------------------------------------------------------------
def encoder_reference(x_nchw, conv_w, bn_gamma, bn_beta, bn_mean, bn_var):
    y = lax.conv_general_dilated(
        x_nchw, conv_w,
        window_strides=(STRIDE, STRIDE),
        padding=((PAD, PAD), (PAD, PAD)),
        dimension_numbers=("NCHW", "OIHW", "NCHW"),
        precision=lax.Precision.HIGHEST,
    )
    scale = (bn_gamma / jnp.sqrt(bn_var + BN_EPS)).reshape(1, COUT, 1, 1)
    bias = (bn_beta - bn_mean * bn_gamma / jnp.sqrt(bn_var + BN_EPS)).reshape(1, COUT, 1, 1)
    return jnp.maximum(y * scale + bias, 0.0)


if __name__ == "__main__":
    key = jax.random.PRNGKey(0)
    k_x, k_w, k_g, k_b, k_m, k_v = jax.random.split(key, 6)

    # Small shapes consistent with the ResNet-50 stem: NCHW input with 3 channels.
    x = jax.random.normal(k_x, (2, 3, 16, 16), dtype=jnp.float32)

    # Deterministic synthetic parameters (shapes of ResNet-50 conv1 / bn1).
    conv_w = jax.random.normal(k_w, (COUT, CIN, KH, KW), dtype=jnp.float32) * 0.05
    bn_gamma = 1.0 + 0.1 * jax.random.normal(k_g, (COUT,), dtype=jnp.float32)
    bn_beta = 0.1 * jax.random.normal(k_b, (COUT,), dtype=jnp.float32)
    bn_mean = 0.1 * jax.random.normal(k_m, (COUT,), dtype=jnp.float32)
    bn_var = jnp.abs(jax.random.normal(k_v, (COUT,), dtype=jnp.float32)) + 0.5

    out = encoder_forward(x, conv_w, bn_gamma, bn_beta, bn_mean, bn_var)
    out = jax.block_until_ready(out)

    ref = encoder_reference(x, conv_w, bn_gamma, bn_beta, bn_mean, bn_var)
    assert out.shape == (2, 64, 8, 8), out.shape
    # bf16 matmul operands + bf16 store (f32 accumulate) -> loosened tolerance.
    assert jnp.allclose(out, ref, atol=5e-2, rtol=5e-2), "mismatch vs reference"

    print("KERNEL_OK")
</pallas_src>

<mosaic_0001>
module attributes {stable_mosaic.version = 11 : i64} {
  func.func @_encoder_stem_kernel(%arg0: i32, %arg1: memref<128x147xbf16, #tpu.memory_space<vmem>>, %arg2: memref<147x128xbf16, #tpu.memory_space<vmem>>, %arg3: memref<1x128xf32, #tpu.memory_space<vmem>>, %arg4: memref<128x128xbf16, #tpu.memory_space<vmem>>) attributes {dimension_semantics = [#tpu.dimension_semantics<parallel>], iteration_bounds = array<i64: 1>, scalar_prefetch = 0 : i64, scratch_operands = 0 : i64, tpu.core_type = #tpu.core_type<tc>, window_params = [{transform_indices = @transform_0, window_bounds = array<i64: 128, 147>}, {pipeline_mode = #tpu.pipeline_mode<synchronous>, transform_indices = @transform_1, window_bounds = array<i64: 147, 128>}, {pipeline_mode = #tpu.pipeline_mode<synchronous>, transform_indices = @transform_2, window_bounds = array<i64: 1, 128>}, {transform_indices = @transform_3, window_bounds = array<i64: 128, 128>}]} {
    %c0 = arith.constant 0 : index
    %c0_0 = arith.constant 0 : index
    %0 = vector.load %arg1[%c0, %c0_0] : memref<128x147xbf16, #tpu.memory_space<vmem>>, vector<128x147xbf16>
    %c0_1 = arith.constant 0 : index
    %c0_2 = arith.constant 0 : index
    %1 = vector.load %arg2[%c0_1, %c0_2] : memref<147x128xbf16, #tpu.memory_space<vmem>>, vector<147x128xbf16>
    %cst = arith.constant dense<0.000000e+00> : vector<128x128xf32>
    %2 = tpu.matmul %0, %1, %cst {dimension_numbers = #tpu.dot_dimension_numbers<[1], [0], [0], [1], [0, 0, 1, 1], [], []>} : vector<128x147xbf16>, vector<147x128xbf16>, vector<128x128xf32> -> vector<128x128xf32>
    %c0_3 = arith.constant 0 : index
    %c0_4 = arith.constant 0 : index
    %3 = vector.load %arg3[%c0_3, %c0_4] : memref<1x128xf32, #tpu.memory_space<vmem>>, vector<1x128xf32>
    %4 = vector.broadcast %3 : vector<1x128xf32> to vector<128x128xf32>
    %5 = arith.addf %2, %4 : vector<128x128xf32>
    %cst_5 = arith.constant 0.000000e+00 : f32
    %6 = vector.broadcast %cst_5 : f32 to vector<128x128xf32>
    %7 = arith.maximumf %5, %6 : vector<128x128xf32>
    %8 = arith.truncf %7 : vector<128x128xf32> to vector<128x128xbf16>
    %c0_6 = arith.constant 0 : index
    %c0_7 = arith.constant 0 : index
    %9 = vector.load %arg4[%c0_6, %c0_7] : memref<128x128xbf16, #tpu.memory_space<vmem>>, vector<128x128xbf16>
    tpu.vector_store %arg4[%c0_6, %c0_7], %8 {strides = array<i32>} : memref<128x128xbf16, #tpu.memory_space<vmem>>, vector<128x128xbf16>,
    return
  }
  func.func @transform_0(%arg0: i32) -> (i32, i32) {
    %c0_i32 = arith.constant 0 : i32
    %c0_i32_0 = arith.constant 0 : i32
    return %arg0, %c0_i32 : i32, i32
  }
  func.func @transform_1(%arg0: i32) -> (i32, i32) {
    %c0_i32 = arith.constant 0 : i32
    %c0_i32_0 = arith.constant 0 : i32
    %c0_i32_1 = arith.constant 0 : i32
    return %c0_i32, %c0_i32_0 : i32, i32
  }
  func.func @transform_2(%arg0: i32) -> (i32, i32) {
    %c0_i32 = arith.constant 0 : i32
    %c0_i32_0 = arith.constant 0 : i32
    %c0_i32_1 = arith.constant 0 : i32
    return %c0_i32, %c0_i32_0 : i32, i32
  }
  func.func @transform_3(%arg0: i32) -> (i32, i32) {
    %c0_i32 = arith.constant 0 : i32
    %c0_i32_0 = arith.constant 0 : i32
    return %arg0, %c0_i32 : i32, i32
  }
}

</mosaic_0001>

<bundles_post_ra>
// kernel: encoder_forward.1
= control target key start
LH: loop header
LB: loop body
LE: loop exit
PB: predicated region body
PF: predicated region fallthrough
CT: control target
= control target key end

     0   :  { %vm208_vm0 = vcmask 1040384   ;;  %vm209_vm1 = vcmask 1041408   ;;  %v557_v2 = vmov 65535   ;;  %vm183_vm2 = vcmask 154624   ;;  %s757_s1 = inlined_call_operand.vmem [shape: bf16[147,128], index: 1, kind: input, shape index: {}]   ;;  %s758_s0 = inlined_call_operand.vmem [shape: bf16[128,147], index: 0, kind: input, shape index: {}]   ;;  %s759_s2 = inlined_call_operand.vmem [shape: f32[1,128], index: 2, kind: input, shape index: {}]   ;;  %s760_s3 = inlined_call_operand.vmem [shape: bf16[128,128], index: 3, kind: output, shape index: {}]  }
   0x1   :  { %v496_v0 = vld [vmem:[%s757_s1 + $0x38] sm:$0xff]  ;;  %v49_v1 = vld [vmem:[%s757_s1 + $0x48] sm:$0x3]  ;;  %v210_v3 = vsel %vm208_vm0, 4294967295, %v557_v2  ;;  %v495_v5 = vld [vmem:[%s757_s1 + $0x30] sm:$0xff] }
   0x2   :  { %v163_v4 = vunpack.c.l.b16 %v49_v1  ;;  %215 = vmatpush.bf16.msra.mxu0 %v496_v0  ;;  %545 = vmatpush.bf16.msra.mxu2 %v496_v0  ;;  %v211_v6 = vsel %vm209_vm1, %v210_v3, 0  ;;  %v494_v9 = vld [vmem:[%s757_s1 + $0x28] sm:$0xff]  ;;  %v497_v10 = vld [vmem:[%s757_s1 + $0x40] sm:$0xff]  ;;  %v483_v13 = vld [vmem:[%s758_s0 + $0x54] sm:$0xf] }
   0x3   :  { %v473_v11 = vld [vmem:[%s758_s0 + $0x4] sm:$0xf]  ;;  %v369_v12 = vld [vmem:[%s758_s0 + $0x8] sm:$0xf0]  ;;  %v409_v14 = vld [vmem:[%s758_s0 + $0x58] sm:$0xf0] }
   0x4   :  { %v173_v7 = vpack.c.b16 %v163_v4, %v163_v4  ;;  %v372_v15 = vor.u32 %v473_v11, %v369_v12  ;;  %v493_v16 = vld [vmem:[%s757_s1 + $0x20] sm:$0xff]  ;;  %v412_v17 = vor.u32 %v483_v13, %v409_v14  ;;  %v492_v18 = vld [vmem:[%s757_s1 + $0x18] sm:$0xff]  ;;  %v491_v19 = vld [vmem:[%s757_s1 + $0x10] sm:$0xff] }
   0x5   :  { %v490_v20 = vld [vmem:[%s757_s1 + $0x8] sm:$0xff]  ;;  %v475_v21 = vld [vmem:[%s758_s0 + $0x14] sm:$0xf]  ;;  %v377_v22 = vld [vmem:[%s758_s0 + $0x18] sm:$0xf0] }
   0x6   :  { %v213_v8 = vand.u32 %v211_v6, %v173_v7  ;;  %216 = vmatpush.bf16.msra.mxu0 %v495_v5  ;;  %546 = vmatpush.bf16.msra.mxu2 %v495_v5  ;;  %v485_v23 = vld [vmem:[%s758_s0 + $0x64] sm:$0xf]  ;;  %v417_v24 = vld [vmem:[%s758_s0 + $0x68] sm:$0xf0]  ;;  %v380_v25 = vor.u32 %v475_v21, %v377_v22  ;;  %v367_v27 = vld [vmem:[%s758_s0] sm:$0xf] }
   0x7   :  { %v489_v26 = vld [vmem:[%s757_s1] sm:$0xff]  ;;  %v474_v28 = vld [vmem:[%s758_s0 + $0x4] sm:$0xf0]  ;;  %v420_v31 = vor.u32 %v485_v23, %v417_v24  ;;  %v385_v35 = vld [vmem:[%s758_s0 + $0x28] sm:$0xf0] }
   0x8   :  { %270 = vmatpush.bf16.msra.mxu1 %v213_v8  ;;  %553 = vmatpush.bf16.msra.mxu3 %v213_v8  ;;  %v399_v29 = vld [vmem:[%s758_s0 + $0x40] sm:$0xf]  ;;  %v482_v30 = vld [vmem:[%s758_s0 + $0x44] sm:$0xf0]  ;;  %v368_v32 = vor.u32 %v474_v28, %v367_v27  ;;  %v477_v34 = vld [vmem:[%s758_s0 + $0x24] sm:$0xf] }
   0x9   :  { %v400_v33 = vor.u32 %v482_v30, %v399_v29  ;;  %v487_v36 = vld [vmem:[%s758_s0 + $0x74] sm:$0xf]  ;;  %v425_v37 = vld [vmem:[%s758_s0 + $0x78] sm:$0xf0]  ;;  %v388_v38 = vor.u32 %v477_v34, %v385_v35  ;;  %v375_v39 = vld [vmem:[%s758_s0 + $0x10] sm:$0xf] }
   0xa   :  { %217 = vmatpush.bf16.msra.mxu0 %v494_v9  ;;  %547 = vmatpush.bf16.msra.mxu2 %v494_v9  ;;  %v476_v40 = vld [vmem:[%s758_s0 + $0x14] sm:$0xf0]  ;;  %v407_v41 = vld [vmem:[%s758_s0 + $0x50] sm:$0xf]  ;;  %v428_v43 = vor.u32 %v487_v36, %v425_v37  ;;  %v479_v46 = vld [vmem:[%s758_s0 + $0x34] sm:$0xf] }
   0xb   :  { %v484_v42 = vld [vmem:[%s758_s0 + $0x54] sm:$0xf0]  ;;  %v376_v44 = vor.u32 %v476_v40, %v375_v39  ;;  %v393_v47 = vld [vmem:[%s758_s0 + $0x38] sm:$0xf0]  ;;  %v383_v49 = vld [vmem:[%s758_s0 + $0x20] sm:$0xf] }
   0xc   :  { %271 = vmatpush.bf16.msra.mxu1 %v497_v10  ;;  %554 = vmatpush.bf16.msra.mxu3 %v497_v10  ;;  %v408_v45 = vor.u32 %v484_v42, %v407_v41  ;;  %v396_v48 = vor.u32 %v479_v46, %v393_v47  ;;  %v478_v50 = vld [vmem:[%s758_s0 + $0x24] sm:$0xf0]  ;;  %v415_v51 = vld [vmem:[%s758_s0 + $0x60] sm:$0xf]  ;;  %v481_v55 = vld [vmem:[%s758_s0 + $0x44] sm:$0xf] }
   0xd   :  { %v486_v52 = vld [vmem:[%s758_s0 + $0x64] sm:$0xf0]  ;;  %v384_v53 = vor.u32 %v478_v50, %v383_v49  ;;  %v401_v56 = vld [vmem:[%s758_s0 + $0x48] sm:$0xf0]  ;;  %v391_v58 = vld [vmem:[%s758_s0 + $0x30] sm:$0xf] }
   0xe   :  { %218 = vmatpush.bf16.msra.mxu0 %v493_v16  ;;  %548 = vmatpush.bf16.msra.mxu2 %v493_v16  ;;  %v416_v54 = vor.u32 %v486_v52, %v415_v51  ;;  %v404_v57 = vor.u32 %v481_v55, %v401_v56  ;;  %v480_v59 = vld [vmem:[%s758_s0 + $0x34] sm:$0xf0]  ;;  %v423_v60 = vld [vmem:[%s758_s0 + $0x70] sm:$0xf]  ;;  %v715_v4 = vld [vmem:[%s759_s2] ss:$0 sm:$0xff] }
   0xf   :  { %465 = vmatmul.msk.bf16.vlgmr.msra.gmra.mxu1 %vm183_vm2, %v372_v15  ;;  %470 = vmatmul.msk.bf16.vlgmr.msra.gmra.mxu3 %vm183_vm2, %v412_v17  ;;  %v488_v61 = vld [vmem:[%s758_s0 + $0x74] sm:$0xf0]  ;;  %v392_v62 = vor.u32 %v480_v59, %v391_v58 }
  0x10   :  { %v424_v63 = vor.u32 %v488_v61, %v423_v60 }
  0x12   :  { %219 = vmatpush.bf16.msra.mxu0 %v492_v18  ;;  %549 = vmatpush.bf16.msra.mxu2 %v492_v18 }
  0x16   :  { %220 = vmatpush.bf16.msra.mxu0 %v491_v19  ;;  %550 = vmatpush.bf16.msra.mxu2 %v491_v19 }
  0x1a   :  { %221 = vmatpush.bf16.msra.mxu0 %v490_v20  ;;  %551 = vmatpush.bf16.msra.mxu2 %v490_v20 }
  0x1e   :  { %222 = vmatpush.bf16.msra.mxu0 %v489_v26  ;;  %552 = vmatpush.bf16.msra.mxu2 %v489_v26 }
  0x1f   :  { %466 = vmatmul.msk.bf16.gmra.mxu1 %vm183_vm2, %v380_v25  ;;  %471 = vmatmul.msk.bf16.gmra.mxu3 %vm183_vm2, %v420_v31 }
  0x21   :  { %223 = vmatmul.bf16.vlgmr.msra.gmra.mxu0 %v368_v32  ;;  %243 = vmatmul.bf16.vlgmr.msra.gmra.mxu2 %v400_v33 }
  0x2f   :  { %467 = vmatmul.msk.bf16.gmra.mxu1 %vm183_vm2, %v388_v38  ;;  %472 = vmatmul.msk.bf16.gmra.mxu3 %vm183_vm2, %v428_v43 }
  0x31   :  { %228 = vmatmul.bf16.gmra.mxu0 %v376_v44  ;;  %248 = vmatmul.bf16.gmra.mxu2 %v408_v45 }
  0x3f   :  { %468 = vmatmul.msk.bf16.gmra.mxu1 %vm183_vm2, %v396_v48 }
  0x41   :  { %233 = vmatmul.bf16.gmra.mxu0 %v384_v53  ;;  %253 = vmatmul.bf16.gmra.mxu2 %v416_v54 }
  0x4f   :  { %469 = vmatmul.msk.bf16.gmra.mxu1 %vm183_vm2, %v404_v57 }
  0x51   :  { %238 = vmatmul.bf16.gmra.mxu0 %v392_v62  ;;  %258 = vmatmul.bf16.gmra.mxu2 %v424_v63 }
  0x8c   :  { %v273_v0 = vpop.f32.mrf.mxu1 }
  0x92   :  { %v298_v17 = vpop.f32.mrf.mxu3 }
  0x94   :  { %v275_v1 = vpop.f32.mrf.mxu1 }
  0x9a   :  { %v300_v25 = vpop.f32.mrf.mxu3 }
  0x9c   :  { %v278_v2 = vpop.f32.mrf.mxu1 }
  0x9e   :  { %v224_v3 = vpop.f32.mrf.mxu0 }
  0x9f   :  { %v225_v5 = vadd.f32 %v715_v4, %v224_v3 }
  0xa1   :  { %v274_v9 = vadd.f32 %v273_v0, %v225_v5 }
  0xa2   :  { %v303_v37 = vpop.f32.mrf.mxu3 }
  0xa3   :  { %v313_v12 = vmax.f32 %v274_v9, 0.0 }
  0xa4   :  { %v280_v6 = vpop.f32.mrf.mxu1  ;;  %v244_v7 = vpop.f32.mrf.mxu2 }
  0xa5   :  { %v245_v58 = vadd.f32 %v715_v4, %v244_v7 }
  0xa6   :  { %v226_v8 = vpop.f32.mrf.mxu0 }
  0xa7   :  { %v227_v10 = vadd.f32 %v715_v4, %v226_v8 }
  0xa9   :  { %v276_v11 = vadd.f32 %v275_v1, %v227_v10 }
  0xaa   :  { %v305_v51 = vpop.f32.mrf.mxu3 }
  0xab   :  { %v314_v13 = vmax.f32 %v276_v11, 0.0 }
  0xac   :  { %v283_v14 = vpop.f32.mrf.mxu1  ;;  %v246_v16 = vpop.f32.mrf.mxu2 }
  0xad   :  { %v501_v15 = vpack.c.bf16 %v314_v13, %v313_v12  ;;  %v247_v60 = vadd.f32 %v715_v4, %v246_v16 }
  0xae   :  { %v229_v18 = vpop.f32.mrf.mxu0 }
  0xaf   :  { %502 = vst [vmem:[%s760_s3] sm:$0xff] %v501_v15   ;;  %v230_v19 = vadd.f32 %v715_v4, %v229_v18 }
  0xb1   :  { %v279_v23 = vadd.f32 %v278_v2, %v230_v19 }
  0xb2   :  { %v308_v5 = vpop.f32.mrf.mxu3 }
  0xb3   :  { %v315_v28 = vmax.f32 %v279_v23, 0.0 }
  0xb4   :  { %v285_v20 = vpop.f32.mrf.mxu1  ;;  %v249_v21 = vpop.f32.mrf.mxu2 }
  0xb5   :  { %v250_v27 = vadd.f32 %v715_v4, %v249_v21 }
  0xb6   :  { %v231_v22 = vpop.f32.mrf.mxu0 }
  0xb7   :  { %v232_v24 = vadd.f32 %v715_v4, %v231_v22  ;;  %v299_v33 = vadd.f32 %v298_v17, %v250_v27 }
  0xb9   :  { %v281_v26 = vadd.f32 %v280_v6, %v232_v24  ;;  %v323_v38 = vmax.f32 %v299_v33, 0.0 }
  0xba   :  { %v310_v21 = vpop.f32.mrf.mxu3 }
  0xbb   :  { %v316_v29 = vmax.f32 %v281_v26, 0.0 }
  0xbc   :  { %v288_v30 = vpop.f32.mrf.mxu1  ;;  %v251_v32 = vpop.f32.mrf.mxu2 }
  0xbd   :  { %v506_v31 = vpack.c.bf16 %v316_v29, %v315_v28  ;;  %v252_v34 = vadd.f32 %v715_v4, %v251_v32 }
  0xbe   :  { %v234_v35 = vpop.f32.mrf.mxu0 }
  0xbf   :  { %538 = vst [vmem:[%s760_s3 + $0x8] sm:$0xff] %v506_v31   ;;  %v301_v36 = vadd.f32 %v300_v25, %v252_v34  ;;  %v235_v40 = vadd.f32 %v715_v4, %v234_v35 }
  0xc1   :  { %v324_v39 = vmax.f32 %v301_v36, 0.0  ;;  %v284_v45 = vadd.f32 %v283_v14, %v235_v40 }
  0xc3   :  { %v526_v42 = vpack.c.bf16 %v324_v39, %v323_v38  ;;  %v317_v49 = vmax.f32 %v284_v45, 0.0 }
  0xc4   :  { %v290_v41 = vpop.f32.mrf.mxu1  ;;  %v254_v43 = vpop.f32.mrf.mxu2 }
  0xc5   :  { %542 = vst [vmem:[%s760_s3 + $0x28] sm:$0xff] %v526_v42   ;;  %v255_v48 = vadd.f32 %v715_v4, %v254_v43 }
  0xc6   :  { %v236_v44 = vpop.f32.mrf.mxu0 }
  0xc7   :  { %v237_v46 = vadd.f32 %v715_v4, %v236_v44  ;;  %v304_v55 = vadd.f32 %v303_v37, %v255_v48 }
  0xc9   :  { %v286_v47 = vadd.f32 %v285_v20, %v237_v46  ;;  %v325_v61 = vmax.f32 %v304_v55, 0.0 }
  0xcb   :  { %v318_v50 = vmax.f32 %v286_v47, 0.0 }
  0xcc   :  { %v293_v52 = vpop.f32.mrf.mxu1  ;;  %v256_v54 = vpop.f32.mrf.mxu2 }
  0xcd   :  { %v511_v53 = vpack.c.bf16 %v318_v50, %v317_v49  ;;  %v257_v56 = vadd.f32 %v715_v4, %v256_v54  ;;  %v294_v62 = vadd.f32 %v293_v52, %v245_v58 }
  0xce   :  { %v239_v57 = vpop.f32.mrf.mxu0 }
  0xcf   :  { %539 = vst [vmem:[%s760_s3 + $0x10] sm:$0xff] %v511_v53   ;;  %v306_v59 = vadd.f32 %v305_v51, %v257_v56  ;;  %v240_v0 = vadd.f32 %v715_v4, %v239_v57  ;;  %v321_v8 = vmax.f32 %v294_v62, 0.0 }
  0xd1   :  { %v326_v63 = vmax.f32 %v306_v59, 0.0  ;;  %v289_v10 = vadd.f32 %v288_v30, %v240_v0 }
  0xd3   :  { %v531_v2 = vpack.c.bf16 %v326_v63, %v325_v61  ;;  %v319_v15 = vmax.f32 %v289_v10, 0.0 }
  0xd4   :  { %v295_v1 = vpop.f32.mrf.mxu1  ;;  %v259_v6 = vpop.f32.mrf.mxu2 }
  0xd5   :  { %v296_v3 = vadd.f32 %v295_v1, %v247_v60  ;;  %543 = vst [vmem:[%s760_s3 + $0x30] sm:$0xff] %v531_v2   ;;  %v260_v14 = vadd.f32 %v715_v4, %v259_v6 }
  0xd6   :  { %v241_v7 = vpop.f32.mrf.mxu0 }
  0xd7   :  { %v322_v9 = vmax.f32 %v296_v3, 0.0  ;;  %v242_v11 = vadd.f32 %v715_v4, %v241_v7  ;;  %v309_v19 = vadd.f32 %v308_v5, %v260_v14 }
  0xd9   :  { %v521_v12 = vpack.c.bf16 %v322_v9, %v321_v8  ;;  %v291_v13 = vadd.f32 %v290_v41, %v242_v11  ;;  %v327_v23 = vmax.f32 %v309_v19, 0.0 }
  0xdb   :  { %541 = vst [vmem:[%s760_s3 + $0x20] sm:$0xff] %v521_v12   ;;  %v320_v16 = vmax.f32 %v291_v13, 0.0 }
  0xdc   :  { %v261_v18 = vpop.f32.mrf.mxu2 }
  0xdd   :  { %v516_v17 = vpack.c.bf16 %v320_v16, %v319_v15  ;;  %v262_v20 = vadd.f32 %v715_v4, %v261_v18 }
  0xdf   :  { %540 = vst [vmem:[%s760_s3 + $0x18] sm:$0xff] %v516_v17   ;;  %v311_v22 = vadd.f32 %v310_v21, %v262_v20 }
  0xe1   :  { %v328_v24 = vmax.f32 %v311_v22, 0.0 }
  0xe3   :  { %v536_v25 = vpack.c.bf16 %v328_v24, %v327_v23 }
  0xe5   :  { %544 = vst [vmem:[%s760_s3 + $0x38] sm:$0xff] %v536_v25  }

</bundles_post_ra>
